<compile_context>
chip_gen: v7x
topology: tpu7x:2x2x1
jax: 0.10.0
libtpu: 0.0.40
codegen_flags: <defaults>
</compile_context>

<pallas_src>
import jax
import jax.numpy as jnp
from jax.experimental import pallas as pl
from jax.experimental.pallas import tpu as pltpu

# start_size=2, layer_list=(4, 4, 4, 2)  (same for both networks)
LAYER_SIZES = (2, 4, 4, 4, 2)
N_LAYERS = len(LAYER_SIZES) - 1

LANE = 128                    # TPU lane width
SUBLANE = 8                   # f32 sublane count
CHUNK_ROWS = 8                # one f32 vreg (8 sublanes x 128 lanes) per chunk
DEFAULT_MAX_TILE_ROWS = 4096  # 4096 rows * 128 lanes * 4 B * 3 arrays * 2 buf ~ 12 MiB
_SPLIT_THRESHOLD_ROWS = 256   # above this, force an even grid (v7x megacore)


def _cdiv(a, b):
    return (a + b - 1) // b


def _round_up(a, m):
    return _cdiv(a, m) * m


# ----------------------------------------------------------------------------
# One-time probe: pin down pltpu.roll's direction convention so the lane-pair
# swizzles below are correct no matter which way tpu.rotate is defined.
# ----------------------------------------------------------------------------
def _roll_probe_kernel(o_ref):
    lane = jax.lax.broadcasted_iota(jnp.int32, (SUBLANE, LANE), 1)
    o_ref[...] = pltpu.roll(lane, 1, 1)


def _detect_roll_shifts():
    """Returns (shift_right, shift_left) such that
       roll(x, shift_right)[l] == x[l-1]  and  roll(x, shift_left)[l] == x[l+1]
    (circularly, along the 128-lane axis)."""
    try:
        out = pl.pallas_call(
            _roll_probe_kernel,
            out_shape=jax.ShapeDtypeStruct((SUBLANE, LANE), jnp.int32),
        )()
        if int(out[0, 1]) == 0:          # np.roll convention: out[l] = in[l-1]
            return 1, LANE - 1
        return LANE - 1, 1               # inverted convention
    except Exception:                    # pragma: no cover - fall back to np.roll
        return 1, LANE - 1


_SHIFT_RIGHT, _SHIFT_LEFT = _detect_roll_shifts()


# ----------------------------------------------------------------------------
# Trace-time parameter folding / packing
# ----------------------------------------------------------------------------
def _fold_and_pack(params0, params1):
    """Collapse layers 0-2 of each net (exact: no nonlinearity between them)
    and pack both nets into one (6, 8) f32 slab for SMEM.

    Column convention: cols 0..3 feed EVEN lanes (net 0, "p"),
                       cols 4..7 feed ODD  lanes (net 1, "c").
      row 0 : Weff[0, j]        (input feature 0 -> hidden j)
      row 1 : Weff[1, j]        (input feature 1 -> hidden j)
      row 2 : beff[j]           (effective hidden bias)
      row 3 : same-lane output weights  W3_0[j,0] | W3_1[j,1]
      row 4 : cross-lane output weights W3_0[j,1] | W3_1[j,0]
      row 5 : output biases  b3_0[0], b3_0[1], b3_1[0], b3_1[1], 0...
    """
    def fold(params):
        (w0, b0), (w1, b1), (w2, b2), (w3, b3) = params
        weff = w0 @ w1 @ w2                  # (2, 4)
        beff = (b0 @ w1 + b1) @ w2 + b2      # (1, 4)
        return weff, beff[0], w3, b3[0]

    we0, be0, w3_0, b3_0 = fold(params0)
    we1, be1, w3_1, b3_1 = fold(params1)

    pk = jnp.zeros((6, 8), jnp.float32)
    pk = pk.at[0, 0:4].set(we0[0]);      pk = pk.at[0, 4:8].set(we1[0])
    pk = pk.at[1, 0:4].set(we0[1]);      pk = pk.at[1, 4:8].set(we1[1])
    pk = pk.at[2, 0:4].set(be0);         pk = pk.at[2, 4:8].set(be1)
    pk = pk.at[3, 0:4].set(w3_0[:, 0]);  pk = pk.at[3, 4:8].set(w3_1[:, 1])
    pk = pk.at[4, 0:4].set(w3_0[:, 1]);  pk = pk.at[4, 4:8].set(w3_1[:, 0])
    pk = pk.at[5, 0].set(b3_0[0]);       pk = pk.at[5, 1].set(b3_0[1])
    pk = pk.at[5, 2].set(b3_1[0]);       pk = pk.at[5, 3].set(b3_1[1])
    return pk


# ----------------------------------------------------------------------------
# Kernel
# ----------------------------------------------------------------------------
def _vague_kernel(pk_ref, x_ref, p_ref, c_ref):
    """pk_ref : (6, 8) f32 SMEM  — packed folded parameters (resident).
    x_ref  : (tile_rows, 128) f32 VMEM — x in natural interleaved order:
             lane 2k   = x[k, 0], lane 2k+1 = x[k, 1].
    p_ref  : (tile_rows, 128) f32 VMEM — net 0 output, same interleaving.
    c_ref  : (tile_rows, 128) f32 VMEM — net 1 output, same interleaving.

    Even lanes run net 0's hidden units, odd lanes run net 1's.  The only
    cross-lane traffic is the pair-broadcast of the inputs and one pair-swap
    of the cross-component partial sums (pltpu.roll on the otherwise-idle
    XLU).  All weights are scalars from SMEM or lane-parity-selected one-vreg
    constants hoisted out of the loop; tanh lowers to the EUP.
    """
    tile_rows = x_ref.shape[0]
    num_chunks = tile_rows // CHUNK_ROWS

    lane = jax.lax.broadcasted_iota(jnp.int32, (CHUNK_ROWS, LANE), 1)
    even = (lane & 1) == 0

    def psel(row, col_even, col_odd):
        return jnp.where(even, pk_ref[row, col_even], pk_ref[row, col_odd])

    # Hoisted one-vreg, lane-parity-dependent parameter constants.
    A = [psel(0, j, 4 + j) for j in range(4)]   # weight for x-feature 0
    B = [psel(1, j, 4 + j) for j in range(4)]   # weight for x-feature 1
    C = [psel(2, j, 4 + j) for j in range(4)]   # effective hidden bias
    U = [psel(3, j, 4 + j) for j in range(4)]   # same-lane output weights
    V = [psel(4, j, 4 + j) for j in range(4)]   # cross-lane output weights
    BP = psel(5, 0, 1)                          # p biases (even->comp0, odd->comp1)
    BC = psel(5, 2, 3)                          # c biases

    def body(i, carry):
        r0 = pl.multiple_of(i * CHUNK_ROWS, CHUNK_ROWS)
        x = x_ref[pl.ds(r0, CHUNK_ROWS), :]
        xr = pltpu.roll(x, _SHIFT_RIGHT, 1)     # [l] <- x[l-1]
        xl = pltpu.roll(x, _SHIFT_LEFT, 1)      # [l] <- x[l+1]
        x0 = jnp.where(even, x, xr)             # feature 0 on both lanes of a pair
        x1 = jnp.where(even, xl, x)             # feature 1 on both lanes of a pair

        s = None                                # same-lane partial sums
        t = None                                # cross-lane partial sums
        for j in range(4):
            h = jnp.tanh(A[j] * x0 + B[j] * x1 + C[j])
            s = U[j] * h if s is None else s + U[j] * h
            t = V[j] * h if t is None else t + V[j] * h

        # swap each adjacent lane pair of the cross-component sums
        ts = jnp.where(even,
                       pltpu.roll(t, _SHIFT_LEFT, 1),
                       pltpu.roll(t, _SHIFT_RIGHT, 1))

        p_ref[pl.ds(r0, CHUNK_ROWS), :] = jnp.where(even, s, ts) + BP
        c_ref[pl.ds(r0, CHUNK_ROWS), :] = jnp.where(even, ts, s) + BC
        return carry

    jax.lax.fori_loop(0, num_chunks, body, 0, unroll=min(4, num_chunks))


# ----------------------------------------------------------------------------
# Wrapper
# ----------------------------------------------------------------------------
def vague_net_forward(x, params0, params1, *, max_tile_rows=DEFAULT_MAX_TILE_ROWS):
    """x: (batch, 2) float32.  params*: list of (W:(in,out), b:(1,out)).
    Returns (p, c), each (batch, 2) float32."""
    batch = x.shape[0]
    nvals = batch * 2

    # Trace-time algebra: collapse layers 0-2 of each net, fuse the two nets.
    pk = _fold_and_pack(params0, params1)

    # ---- adaptive tiling over the flat interleaved value stream ----
    rows = _round_up(_cdiv(nvals, LANE), SUBLANE)
    num_tiles = _cdiv(rows, max_tile_rows)
    if rows >= _SPLIT_THRESHOLD_ROWS and num_tiles % 2 == 1:
        num_tiles += 1                       # even grid -> both v7x TensorCores busy
    tile_rows = _round_up(_cdiv(rows, num_tiles), SUBLANE)
    grid_n = _cdiv(rows, tile_rows)
    rows_total = grid_n * tile_rows
    total_vals = rows_total * LANE

    # Natural interleaved layout: reshape is a free view; pad only if ragged.
    xf = x.astype(jnp.float32).reshape(-1)
    if total_vals != nvals:
        xf = jnp.pad(xf, (0, total_vals - nvals))
    x2 = xf.reshape(rows_total, LANE)

    double_buf_bytes = 2 * 3 * tile_rows * LANE * 4   # x, p, c double-buffered

    p2, c2 = pl.pallas_call(
        _vague_kernel,
        out_shape=(
            jax.ShapeDtypeStruct((rows_total, LANE), jnp.float32),
            jax.ShapeDtypeStruct((rows_total, LANE), jnp.float32),
        ),
        grid=(grid_n,),
        in_specs=[
            # one resident parameter slab (scalars) — no per-step DMAs
            pl.BlockSpec(memory_space=pltpu.MemorySpace.SMEM),
            # batch-tiled, double-buffered, lane-dense input
            pl.BlockSpec((tile_rows, LANE), lambda i: (i, 0)),
        ],
        out_specs=(
            pl.BlockSpec((tile_rows, LANE), lambda i: (i, 0)),
            pl.BlockSpec((tile_rows, LANE), lambda i: (i, 0)),
        ),
        compiler_params=pltpu.CompilerParams(
            dimension_semantics=("parallel",),
            vmem_limit_bytes=double_buf_bytes + 16 * 1024 * 1024,
        ),
    )(pk, x2)

    def unpack(o2):
        flat = o2.reshape(-1)
        if total_vals != nvals:
            flat = flat[:nvals]
        return flat.reshape(batch, 2)        # free view when no padding was added

    return unpack(p2), unpack(c2)


# ----------------------------------------------------------------------------
# Init / reference / demo
# ----------------------------------------------------------------------------
def init_network_params(key):
    """Deterministic PyTorch-Linear-style init: U(-1/sqrt(fan_in), +1/sqrt(fan_in))."""
    params = []
    for i in range(N_LAYERS):
        fan_in, fan_out = LAYER_SIZES[i], LAYER_SIZES[i + 1]
        key, kw, kb = jax.random.split(key, 3)
        bound = 1.0 / float(jnp.sqrt(jnp.float32(fan_in)))
        w = jax.random.uniform(kw, (fan_in, fan_out), jnp.float32, -bound, bound)
        b = jax.random.uniform(kb, (1, fan_out), jnp.float32, -bound, bound)
        params.append((w, b))
    return params, key


def reference_forward(x, params0, params1):
    """Pure-JAX reference mirroring the PyTorch forward semantics layer-by-layer."""
    def run(h, params):
        for i, (w, b) in enumerate(params):
            h = h @ w + b
            if i == N_LAYERS - 2:
                h = jnp.tanh(h)
        return h
    return run(x, params0), run(x, params1)


if __name__ == "__main__":
    key = jax.random.PRNGKey(0)
    key, kx = jax.random.split(key)

    batch = 200  # deliberately NOT a multiple of 64 to exercise the ragged path
    x = jax.random.normal(kx, (batch, LAYER_SIZES[0]), jnp.float32)

    params0, key = init_network_params(key)
    params1, key = init_network_params(key)

    p, c = jax.jit(vague_net_forward)(x, params0, params1)
    p = jax.block_until_ready(p)
    c = jax.block_until_ready(c)

    # sanity check against pure-JAX per-layer reference
    p_ref, c_ref = reference_forward(x, params0, params1)
    assert jnp.allclose(p, p_ref, atol=1e-5, rtol=1e-5), "p mismatch"
    assert jnp.allclose(c, c_ref, atol=1e-5, rtol=1e-5), "c mismatch"

    print("KERNEL_OK")
</pallas_src>

<mosaic_0001>
module attributes {stable_mosaic.version = 11 : i64} {
  func.func @_vague_kernel(%arg0: i32, %arg1: memref<6x8xf32, #tpu.memory_space<smem>>, %arg2: memref<8x128xf32, #tpu.memory_space<vmem>>, %arg3: memref<8x128xf32, #tpu.memory_space<vmem>>, %arg4: memref<8x128xf32, #tpu.memory_space<vmem>>) attributes {dimension_semantics = [#tpu.dimension_semantics<parallel>], iteration_bounds = array<i64: 1>, scalar_prefetch = 0 : i64, scratch_operands = 0 : i64, tpu.core_type = #tpu.core_type<tc>, window_params = [{transform_indices = @transform_0, window_bounds = array<i64: 6, 8>}, {transform_indices = @transform_1, window_bounds = array<i64: 8, 128>}, {transform_indices = @transform_2, window_bounds = array<i64: 8, 128>}, {transform_indices = @transform_3, window_bounds = array<i64: 8, 128>}]} {
    %0 = tpu.iota {dimensions = array<i32: 1>} : vector<8x128xi32>
    %c1_i32 = arith.constant 1 : i32
    %1 = vector.broadcast %c1_i32 : i32 to vector<8x128xi32>
    %2 = arith.andi %0, %1 : vector<8x128xi32>
    %c0_i32 = arith.constant 0 : i32
    %3 = vector.broadcast %c0_i32 : i32 to vector<8x128xi32>
    %4 = arith.cmpi eq, %2, %3 : vector<8x128xi32>
    %c0 = arith.constant 0 : index
    %c0_0 = arith.constant 0 : index
    %5 = memref.load %arg1[%c0, %c0_0] : memref<6x8xf32, #tpu.memory_space<smem>>
    %c0_1 = arith.constant 0 : index
    %c4 = arith.constant 4 : index
    %6 = memref.load %arg1[%c0_1, %c4] : memref<6x8xf32, #tpu.memory_space<smem>>
    %7 = vector.broadcast %5 : f32 to vector<8x128xf32>
    %8 = vector.broadcast %6 : f32 to vector<8x128xf32>
    %9 = arith.select %4, %7, %8 : vector<8x128xi1>, vector<8x128xf32>
    %c0_2 = arith.constant 0 : index
    %c1 = arith.constant 1 : index
    %10 = memref.load %arg1[%c0_2, %c1] : memref<6x8xf32, #tpu.memory_space<smem>>
    %c0_3 = arith.constant 0 : index
    %c5 = arith.constant 5 : index
    %11 = memref.load %arg1[%c0_3, %c5] : memref<6x8xf32, #tpu.memory_space<smem>>
    %12 = vector.broadcast %10 : f32 to vector<8x128xf32>
    %13 = vector.broadcast %11 : f32 to vector<8x128xf32>
    %14 = arith.select %4, %12, %13 : vector<8x128xi1>, vector<8x128xf32>
    %c0_4 = arith.constant 0 : index
    %c2 = arith.constant 2 : index
    %15 = memref.load %arg1[%c0_4, %c2] : memref<6x8xf32, #tpu.memory_space<smem>>
    %c0_5 = arith.constant 0 : index
    %c6 = arith.constant 6 : index
    %16 = memref.load %arg1[%c0_5, %c6] : memref<6x8xf32, #tpu.memory_space<smem>>
    %17 = vector.broadcast %15 : f32 to vector<8x128xf32>
    %18 = vector.broadcast %16 : f32 to vector<8x128xf32>
    %19 = arith.select %4, %17, %18 : vector<8x128xi1>, vector<8x128xf32>
    %c0_6 = arith.constant 0 : index
    %c3 = arith.constant 3 : index
    %20 = memref.load %arg1[%c0_6, %c3] : memref<6x8xf32, #tpu.memory_space<smem>>
    %c0_7 = arith.constant 0 : index
    %c7 = arith.constant 7 : index
    %21 = memref.load %arg1[%c0_7, %c7] : memref<6x8xf32, #tpu.memory_space<smem>>
    %22 = vector.broadcast %20 : f32 to vector<8x128xf32>
    %23 = vector.broadcast %21 : f32 to vector<8x128xf32>
    %24 = arith.select %4, %22, %23 : vector<8x128xi1>, vector<8x128xf32>
    %c1_8 = arith.constant 1 : index
    %c0_9 = arith.constant 0 : index
    %25 = memref.load %arg1[%c1_8, %c0_9] : memref<6x8xf32, #tpu.memory_space<smem>>
    %c1_10 = arith.constant 1 : index
    %c4_11 = arith.constant 4 : index
    %26 = memref.load %arg1[%c1_10, %c4_11] : memref<6x8xf32, #tpu.memory_space<smem>>
    %27 = vector.broadcast %25 : f32 to vector<8x128xf32>
    %28 = vector.broadcast %26 : f32 to vector<8x128xf32>
    %29 = arith.select %4, %27, %28 : vector<8x128xi1>, vector<8x128xf32>
    %c1_12 = arith.constant 1 : index
    %c1_13 = arith.constant 1 : index
    %30 = memref.load %arg1[%c1_12, %c1_13] : memref<6x8xf32, #tpu.memory_space<smem>>
    %c1_14 = arith.constant 1 : index
    %c5_15 = arith.constant 5 : index
    %31 = memref.load %arg1[%c1_14, %c5_15] : memref<6x8xf32, #tpu.memory_space<smem>>
    %32 = vector.broadcast %30 : f32 to vector<8x128xf32>
    %33 = vector.broadcast %31 : f32 to vector<8x128xf32>
    %34 = arith.select %4, %32, %33 : vector<8x128xi1>, vector<8x128xf32>
    %c1_16 = arith.constant 1 : index
    %c2_17 = arith.constant 2 : index
    %35 = memref.load %arg1[%c1_16, %c2_17] : memref<6x8xf32, #tpu.memory_space<smem>>
    %c1_18 = arith.constant 1 : index
    %c6_19 = arith.constant 6 : index
    %36 = memref.load %arg1[%c1_18, %c6_19] : memref<6x8xf32, #tpu.memory_space<smem>>
    %37 = vector.broadcast %35 : f32 to vector<8x128xf32>
    %38 = vector.broadcast %36 : f32 to vector<8x128xf32>
    %39 = arith.select %4, %37, %38 : vector<8x128xi1>, vector<8x128xf32>
    %c1_20 = arith.constant 1 : index
    %c3_21 = arith.constant 3 : index
    %40 = memref.load %arg1[%c1_20, %c3_21] : memref<6x8xf32, #tpu.memory_space<smem>>
    %c1_22 = arith.constant 1 : index
    %c7_23 = arith.constant 7 : index
    %41 = memref.load %arg1[%c1_22, %c7_23] : memref<6x8xf32, #tpu.memory_space<smem>>
    %42 = vector.broadcast %40 : f32 to vector<8x128xf32>
    %43 = vector.broadcast %41 : f32 to vector<8x128xf32>
    %44 = arith.select %4, %42, %43 : vector<8x128xi1>, vector<8x128xf32>
    %c2_24 = arith.constant 2 : index
    %c0_25 = arith.constant 0 : index
    %45 = memref.load %arg1[%c2_24, %c0_25] : memref<6x8xf32, #tpu.memory_space<smem>>
    %c2_26 = arith.constant 2 : index
    %c4_27 = arith.constant 4 : index
    %46 = memref.load %arg1[%c2_26, %c4_27] : memref<6x8xf32, #tpu.memory_space<smem>>
    %47 = vector.broadcast %45 : f32 to vector<8x128xf32>
    %48 = vector.broadcast %46 : f32 to vector<8x128xf32>
    %49 = arith.select %4, %47, %48 : vector<8x128xi1>, vector<8x128xf32>
    %c2_28 = arith.constant 2 : index
    %c1_29 = arith.constant 1 : index
    %50 = memref.load %arg1[%c2_28, %c1_29] : memref<6x8xf32, #tpu.memory_space<smem>>
    %c2_30 = arith.constant 2 : index
    %c5_31 = arith.constant 5 : index
    %51 = memref.load %arg1[%c2_30, %c5_31] : memref<6x8xf32, #tpu.memory_space<smem>>
    %52 = vector.broadcast %50 : f32 to vector<8x128xf32>
    %53 = vector.broadcast %51 : f32 to vector<8x128xf32>
    %54 = arith.select %4, %52, %53 : vector<8x128xi1>, vector<8x128xf32>
    %c2_32 = arith.constant 2 : index
    %c2_33 = arith.constant 2 : index
    %55 = memref.load %arg1[%c2_32, %c2_33] : memref<6x8xf32, #tpu.memory_space<smem>>
    %c2_34 = arith.constant 2 : index
    %c6_35 = arith.constant 6 : index
    %56 = memref.load %arg1[%c2_34, %c6_35] : memref<6x8xf32, #tpu.memory_space<smem>>
    %57 = vector.broadcast %55 : f32 to vector<8x128xf32>
    %58 = vector.broadcast %56 : f32 to vector<8x128xf32>
    %59 = arith.select %4, %57, %58 : vector<8x128xi1>, vector<8x128xf32>
    %c2_36 = arith.constant 2 : index
    %c3_37 = arith.constant 3 : index
    %60 = memref.load %arg1[%c2_36, %c3_37] : memref<6x8xf32, #tpu.memory_space<smem>>
    %c2_38 = arith.constant 2 : index
    %c7_39 = arith.constant 7 : index
    %61 = memref.load %arg1[%c2_38, %c7_39] : memref<6x8xf32, #tpu.memory_space<smem>>
    %62 = vector.broadcast %60 : f32 to vector<8x128xf32>
    %63 = vector.broadcast %61 : f32 to vector<8x128xf32>
    %64 = arith.select %4, %62, %63 : vector<8x128xi1>, vector<8x128xf32>
    %c3_40 = arith.constant 3 : index
    %c0_41 = arith.constant 0 : index
    %65 = memref.load %arg1[%c3_40, %c0_41] : memref<6x8xf32, #tpu.memory_space<smem>>
    %c3_42 = arith.constant 3 : index
    %c4_43 = arith.constant 4 : index
    %66 = memref.load %arg1[%c3_42, %c4_43] : memref<6x8xf32, #tpu.memory_space<smem>>
    %67 = vector.broadcast %65 : f32 to vector<8x128xf32>
    %68 = vector.broadcast %66 : f32 to vector<8x128xf32>
    %69 = arith.select %4, %67, %68 : vector<8x128xi1>, vector<8x128xf32>
    %c3_44 = arith.constant 3 : index
    %c1_45 = arith.constant 1 : index
    %70 = memref.load %arg1[%c3_44, %c1_45] : memref<6x8xf32, #tpu.memory_space<smem>>
    %c3_46 = arith.constant 3 : index
    %c5_47 = arith.constant 5 : index
    %71 = memref.load %arg1[%c3_46, %c5_47] : memref<6x8xf32, #tpu.memory_space<smem>>
    %72 = vector.broadcast %70 : f32 to vector<8x128xf32>
    %73 = vector.broadcast %71 : f32 to vector<8x128xf32>
    %74 = arith.select %4, %72, %73 : vector<8x128xi1>, vector<8x128xf32>
    %c3_48 = arith.constant 3 : index
    %c2_49 = arith.constant 2 : index
    %75 = memref.load %arg1[%c3_48, %c2_49] : memref<6x8xf32, #tpu.memory_space<smem>>
    %c3_50 = arith.constant 3 : index
    %c6_51 = arith.constant 6 : index
    %76 = memref.load %arg1[%c3_50, %c6_51] : memref<6x8xf32, #tpu.memory_space<smem>>
    %77 = vector.broadcast %75 : f32 to vector<8x128xf32>
    %78 = vector.broadcast %76 : f32 to vector<8x128xf32>
    %79 = arith.select %4, %77, %78 : vector<8x128xi1>, vector<8x128xf32>
    %c3_52 = arith.constant 3 : index
    %c3_53 = arith.constant 3 : index
    %80 = memref.load %arg1[%c3_52, %c3_53] : memref<6x8xf32, #tpu.memory_space<smem>>
    %c3_54 = arith.constant 3 : index
    %c7_55 = arith.constant 7 : index
    %81 = memref.load %arg1[%c3_54, %c7_55] : memref<6x8xf32, #tpu.memory_space<smem>>
    %82 = vector.broadcast %80 : f32 to vector<8x128xf32>
    %83 = vector.broadcast %81 : f32 to vector<8x128xf32>
    %84 = arith.select %4, %82, %83 : vector<8x128xi1>, vector<8x128xf32>
    %c4_56 = arith.constant 4 : index
    %c0_57 = arith.constant 0 : index
    %85 = memref.load %arg1[%c4_56, %c0_57] : memref<6x8xf32, #tpu.memory_space<smem>>
    %c4_58 = arith.constant 4 : index
    %c4_59 = arith.constant 4 : index
    %86 = memref.load %arg1[%c4_58, %c4_59] : memref<6x8xf32, #tpu.memory_space<smem>>
    %87 = vector.broadcast %85 : f32 to vector<8x128xf32>
    %88 = vector.broadcast %86 : f32 to vector<8x128xf32>
    %89 = arith.select %4, %87, %88 : vector<8x128xi1>, vector<8x128xf32>
    %c4_60 = arith.constant 4 : index
    %c1_61 = arith.constant 1 : index
    %90 = memref.load %arg1[%c4_60, %c1_61] : memref<6x8xf32, #tpu.memory_space<smem>>
    %c4_62 = arith.constant 4 : index
    %c5_63 = arith.constant 5 : index
    %91 = memref.load %arg1[%c4_62, %c5_63] : memref<6x8xf32, #tpu.memory_space<smem>>
    %92 = vector.broadcast %90 : f32 to vector<8x128xf32>
    %93 = vector.broadcast %91 : f32 to vector<8x128xf32>
    %94 = arith.select %4, %92, %93 : vector<8x128xi1>, vector<8x128xf32>
    %c4_64 = arith.constant 4 : index
    %c2_65 = arith.constant 2 : index
    %95 = memref.load %arg1[%c4_64, %c2_65] : memref<6x8xf32, #tpu.memory_space<smem>>
    %c4_66 = arith.constant 4 : index
    %c6_67 = arith.constant 6 : index
    %96 = memref.load %arg1[%c4_66, %c6_67] : memref<6x8xf32, #tpu.memory_space<smem>>
    %97 = vector.broadcast %95 : f32 to vector<8x128xf32>
    %98 = vector.broadcast %96 : f32 to vector<8x128xf32>
    %99 = arith.select %4, %97, %98 : vector<8x128xi1>, vector<8x128xf32>
    %c4_68 = arith.constant 4 : index
    %c3_69 = arith.constant 3 : index
    %100 = memref.load %arg1[%c4_68, %c3_69] : memref<6x8xf32, #tpu.memory_space<smem>>
    %c4_70 = arith.constant 4 : index
    %c7_71 = arith.constant 7 : index
    %101 = memref.load %arg1[%c4_70, %c7_71] : memref<6x8xf32, #tpu.memory_space<smem>>
    %102 = vector.broadcast %100 : f32 to vector<8x128xf32>
    %103 = vector.broadcast %101 : f32 to vector<8x128xf32>
    %104 = arith.select %4, %102, %103 : vector<8x128xi1>, vector<8x128xf32>
    %c5_72 = arith.constant 5 : index
    %c0_73 = arith.constant 0 : index
    %105 = memref.load %arg1[%c5_72, %c0_73] : memref<6x8xf32, #tpu.memory_space<smem>>
    %c5_74 = arith.constant 5 : index
    %c1_75 = arith.constant 1 : index
    %106 = memref.load %arg1[%c5_74, %c1_75] : memref<6x8xf32, #tpu.memory_space<smem>>
    %107 = vector.broadcast %105 : f32 to vector<8x128xf32>
    %108 = vector.broadcast %106 : f32 to vector<8x128xf32>
    %109 = arith.select %4, %107, %108 : vector<8x128xi1>, vector<8x128xf32>
    %c5_76 = arith.constant 5 : index
    %c2_77 = arith.constant 2 : index
    %110 = memref.load %arg1[%c5_76, %c2_77] : memref<6x8xf32, #tpu.memory_space<smem>>
    %c5_78 = arith.constant 5 : index
    %c3_79 = arith.constant 3 : index
    %111 = memref.load %arg1[%c5_78, %c3_79] : memref<6x8xf32, #tpu.memory_space<smem>>
    %112 = vector.broadcast %110 : f32 to vector<8x128xf32>
    %113 = vector.broadcast %111 : f32 to vector<8x128xf32>
    %114 = arith.select %4, %112, %113 : vector<8x128xi1>, vector<8x128xf32>
    %c0_i32_80 = arith.constant 0 : i32
    %c8_i32 = arith.constant 8 : i32
    %115 = arith.muli %c0_i32_80, %c8_i32 : i32
    %116 = tpu.assume_multiple %115, 8 : i32
    %117 = arith.index_cast %116 : i32 to index
    %c0_81 = arith.constant 0 : index
    %118 = vector.load %arg2[%117, %c0_81] : memref<8x128xf32, #tpu.memory_space<vmem>>, vector<8x128xf32>
    %c1_i32_82 = arith.constant 1 : i32
    %119 = tpu.dynamic_rotate %118 by %c1_i32_82 dim 1 : vector<8x128xf32>, i32 -> vector<8x128xf32>
    %c127_i32 = arith.constant 127 : i32
    %120 = tpu.dynamic_rotate %118 by %c127_i32 dim 1 : vector<8x128xf32>, i32 -> vector<8x128xf32>
    %121 = arith.select %4, %118, %119 : vector<8x128xi1>, vector<8x128xf32>
    %122 = arith.select %4, %120, %118 : vector<8x128xi1>, vector<8x128xf32>
    %123 = arith.mulf %9, %121 : vector<8x128xf32>
    %124 = arith.mulf %29, %122 : vector<8x128xf32>
    %125 = arith.addf %123, %124 : vector<8x128xf32>
    %126 = arith.addf %125, %49 : vector<8x128xf32>
    %127 = math.tanh %126 : vector<8x128xf32>
    %128 = arith.mulf %69, %127 : vector<8x128xf32>
    %129 = arith.mulf %89, %127 : vector<8x128xf32>
    %130 = arith.mulf %14, %121 : vector<8x128xf32>
    %131 = arith.mulf %34, %122 : vector<8x128xf32>
    %132 = arith.addf %130, %131 : vector<8x128xf32>
    %133 = arith.addf %132, %54 : vector<8x128xf32>
    %134 = math.tanh %133 : vector<8x128xf32>
    %135 = arith.mulf %74, %134 : vector<8x128xf32>
    %136 = arith.addf %128, %135 : vector<8x128xf32>
    %137 = arith.mulf %94, %134 : vector<8x128xf32>
    %138 = arith.addf %129, %137 : vector<8x128xf32>
    %139 = arith.mulf %19, %121 : vector<8x128xf32>
    %140 = arith.mulf %39, %122 : vector<8x128xf32>
    %141 = arith.addf %139, %140 : vector<8x128xf32>
    %142 = arith.addf %141, %59 : vector<8x128xf32>
    %143 = math.tanh %142 : vector<8x128xf32>
    %144 = arith.mulf %79, %143 : vector<8x128xf32>
    %145 = arith.addf %136, %144 : vector<8x128xf32>
    %146 = arith.mulf %99, %143 : vector<8x128xf32>
    %147 = arith.addf %138, %146 : vector<8x128xf32>
    %148 = arith.mulf %24, %121 : vector<8x128xf32>
    %149 = arith.mulf %44, %122 : vector<8x128xf32>
    %150 = arith.addf %148, %149 : vector<8x128xf32>
    %151 = arith.addf %150, %64 : vector<8x128xf32>
    %152 = math.tanh %151 : vector<8x128xf32>
    %153 = arith.mulf %84, %152 : vector<8x128xf32>
    %154 = arith.addf %145, %153 : vector<8x128xf32>
    %155 = arith.mulf %104, %152 : vector<8x128xf32>
    %156 = arith.addf %147, %155 : vector<8x128xf32>
    %c127_i32_83 = arith.constant 127 : i32
    %157 = tpu.dynamic_rotate %156 by %c127_i32_83 dim 1 : vector<8x128xf32>, i32 -> vector<8x128xf32>
    %c1_i32_84 = arith.constant 1 : i32
    %158 = tpu.dynamic_rotate %156 by %c1_i32_84 dim 1 : vector<8x128xf32>, i32 -> vector<8x128xf32>
    %159 = arith.select %4, %157, %158 : vector<8x128xi1>, vector<8x128xf32>
    %160 = arith.select %4, %154, %159 : vector<8x128xi1>, vector<8x128xf32>
    %161 = arith.addf %160, %109 : vector<8x128xf32>
    %162 = arith.index_cast %116 : i32 to index
    %c0_85 = arith.constant 0 : index
    %163 = vector.load %arg3[%162, %c0_85] : memref<8x128xf32, #tpu.memory_space<vmem>>, vector<8x128xf32>
    tpu.vector_store %arg3[%162, %c0_85], %161 {strides = array<i32>} : memref<8x128xf32, #tpu.memory_space<vmem>>, vector<8x128xf32>,
    %164 = arith.select %4, %159, %154 : vector<8x128xi1>, vector<8x128xf32>
    %165 = arith.addf %164, %114 : vector<8x128xf32>
    %166 = arith.index_cast %116 : i32 to index
    %c0_86 = arith.constant 0 : index
    %167 = vector.load %arg4[%166, %c0_86] : memref<8x128xf32, #tpu.memory_space<vmem>>, vector<8x128xf32>
    tpu.vector_store %arg4[%166, %c0_86], %165 {strides = array<i32>} : memref<8x128xf32, #tpu.memory_space<vmem>>, vector<8x128xf32>,
    %c1_i32_87 = arith.constant 1 : i32
    return
  }
  func.func @transform_0(%arg0: i32) -> (i32, i32) {
    %c0_i32 = arith.constant 0 : i32
    %c0_i32_0 = arith.constant 0 : i32
    %c0_i32_1 = arith.constant 0 : i32
    return %c0_i32, %c0_i32_0 : i32, i32
  }
  func.func @transform_1(%arg0: i32) -> (i32, i32) {
    %c0_i32 = arith.constant 0 : i32
    %c0_i32_0 = arith.constant 0 : i32
    return %arg0, %c0_i32 : i32, i32
  }
  func.func @transform_2(%arg0: i32) -> (i32, i32) {
    %c0_i32 = arith.constant 0 : i32
    %c0_i32_0 = arith.constant 0 : i32
    return %arg0, %c0_i32 : i32, i32
  }
  func.func @transform_3(%arg0: i32) -> (i32, i32) {
    %c0_i32 = arith.constant 0 : i32
    %c0_i32_0 = arith.constant 0 : i32
    return %arg0, %c0_i32 : i32, i32
  }
}

</mosaic_0001>

<bundles_post_ra>
// kernel: vague_net_forward.1
= control target key start
LH: loop header
LB: loop body
LE: loop exit
PB: predicated region body
PF: predicated region fallthrough
CT: control target
= control target key end

     0   :  { %9 = vsyncpa [#allocation3], 0  ;;  %s483_s0 = inlined_call_operand.vmem [shape: f32[6,8], index: 0, kind: input, shape index: {}]   ;;  %s484_s1 = inlined_call_operand.vmem [shape: f32[8,128], index: 1, kind: input, shape index: {}]   ;;  %s485_s2 = inlined_call_operand.vmem [shape: f32[8,128], index: 2, kind: output, shape index: {0}]   ;;  %s486_s3 = inlined_call_operand.vmem [shape: f32[8,128], index: 3, kind: output, shape index: {1}]  }
   0x1   :  { %s16_s14 = sshll.u32 %s483_s0, 4  ;;  %s17_s14 = int_to_ptr.vmem [resolvable:$true] %s16_s14 }
   0x2   :  { %s254_s15 = scalar_lea.vmem %s17_s14, 128  ;;  %p259_p1 = scmp.lt.s32.totalorder %s17_s14, %s17_s14 }
   0x3   :  { %p255_p0 = scmp.ne.s32.totalorder %s17_s14, %s254_s15  ;;  %p260_p2 = scmp.lt.s32.totalorder %s254_s15, %s254_s15 }
   0x5   :  { %p261_p3 = por %p260_p2, %p259_p1 }
   0x7   :  { %p262_p4 = pnand %p261_p3, %p255_p0 }
   0x9   :  { %265 = shalt.err (!%p262_p4)
}
   0xa   :  { %s268_s16 = smov [#allocation2]  }
   0xb   :  { %19 = dma.vmem_to_smem %s17_s14, 128, %s268_s16, [#allocation3]  }
   0xc   :  { %266 = dma.done.wait [#allocation3], 128  }
   0xd   :  { %267 = vsyncadd [#allocation3], 4294967168 }
   0xe   :  { %25 = sfence }
   0xf   :  { %v297_v0 = vld [vmem:[%s484_s1] sm:$0xff]  ;;  %s269_s19 = smov 1   ;;  %s270_s0 = smov 127   ;;  %v26_v1 = vlaneseq }
  0x10   :  { %141 = vrot.lane.b32.xlu0 %v297_v0, %s269_s19  ;;  %s303_s20 = sld [smem:[#allocation2]]  ;;  %s305_s21 = sld [smem:[#allocation2 + $0x4]] }
  0x11   :  { %s307_s22 = sld [smem:[#allocation2 + $0x1]]  ;;  %s309_s23 = sld [smem:[#allocation2 + $0x5]]  ;;  %v27_v2 = vand.u32 127, %v26_v1 }
  0x12   :  { %s311_s24 = sld [smem:[#allocation2 + $0x2]]  ;;  %s313_s1 = sld [smem:[#allocation2 + $0x6]] }
  0x13   :  { %s315_s25 = sld [smem:[#allocation2 + $0x3]]  ;;  %s317_s26 = sld [smem:[#allocation2 + $0x7]]  ;;  %v28_v3 = vand.u32 1, %v27_v2 }
  0x14   :  { %143 = vrot.lane.b32.xlu0 %v297_v0, %s270_s0  ;;  %s319_s27 = sld [smem:[#allocation2 + $0x80]]  ;;  %s321_s28 = sld [smem:[#allocation2 + $0x84]] }
  0x15   :  { %s323_s29 = sld [smem:[#allocation2 + $0x81]]  ;;  %s325_s30 = sld [smem:[#allocation2 + $0x85]]  ;;  %vm343_vm0 = vcmp.eq.s32.totalorder %v28_v3, 0 }
  0x16   :  { %s327_s4 = sld [smem:[#allocation2 + $0x82]]  ;;  %s329_s5 = sld [smem:[#allocation2 + $0x86]]  ;;  %v32_v5 = vstv %s303_s20  ;;  %v33_v6 = vstv %s305_s21 }
  0x17   :  { %s331_s6 = sld [smem:[#allocation2 + $0x83]]  ;;  %s333_s7 = sld [smem:[#allocation2 + $0x87]]  ;;  %v37_v7 = vstv %s307_s22  ;;  %v38_v8 = vstv %s309_s23  ;;  %v34_v22 = vsel %vm343_vm0, %v32_v5, %v33_v6 }
  0x18   :  { %s335_s8 = sld [smem:[#allocation2 + $0x100]]  ;;  %s337_s9 = sld [smem:[#allocation2 + $0x104]]  ;;  %v42_v9 = vstv %s311_s24  ;;  %v43_v10 = vstv %s313_s1  ;;  %v39_v23 = vsel %vm343_vm0, %v37_v7, %v38_v8 }
  0x19   :  { %s339_s10 = sld [smem:[#allocation2 + $0x101]]  ;;  %s341_s11 = sld [smem:[#allocation2 + $0x105]]  ;;  %v47_v11 = vstv %s315_s25  ;;  %v48_v12 = vstv %s317_s26  ;;  %v44_v24 = vsel %vm343_vm0, %v42_v9, %v43_v10 }
  0x1a   :  { %s347_s12 = sld [smem:[#allocation2 + $0x102]]  ;;  %s349_s13 = sld [smem:[#allocation2 + $0x106]]  ;;  %v52_v13 = vstv %s319_s27  ;;  %v53_v14 = vstv %s321_s28  ;;  %v49_v25 = vsel %vm343_vm0, %v47_v11, %v48_v12 }
  0x1b   :  { %s355_s14 = sld [smem:[#allocation2 + $0x103]]  ;;  %s357_s15 = sld [smem:[#allocation2 + $0x107]]  ;;  %v57_v15 = vstv %s323_s29  ;;  %v58_v16 = vstv %s325_s30  ;;  %v54_v27 = vsel %vm343_vm0, %v52_v13, %v53_v14 }
  0x1c   :  { %v62_v17 = vstv %s327_s4  ;;  %v63_v18 = vstv %s329_s5  ;;  %v59_v28 = vsel %vm343_vm0, %v57_v15, %v58_v16  ;;  %s409_s16 = sld [smem:[#allocation2 + $0x200]]  ;;  %s411_s17 = sld [smem:[#allocation2 + $0x204]] }
  0x1d   :  { %v67_v19 = vstv %s331_s6  ;;  %v68_v20 = vstv %s333_s7  ;;  %v64_v29 = vsel %vm343_vm0, %v62_v17, %v63_v18  ;;  %s413_s18 = sld [smem:[#allocation2 + $0x201]]  ;;  %s415_s20 = sld [smem:[#allocation2 + $0x205]] }
  0x1e   :  { %v69_v30 = vsel %vm343_vm0, %v67_v19, %v68_v20  ;;  %v72_v31 = vstv %s335_s8  ;;  %v73_v32 = vstv %s337_s9  ;;  %s417_s21 = sld [smem:[#allocation2 + $0x180]]  ;;  %s419_s22 = sld [smem:[#allocation2 + $0x184]] }
  0x1f   :  { %v77_v33 = vstv %s339_s10  ;;  %v78_v34 = vstv %s341_s11  ;;  %v74_v49 = vsel %vm343_vm0, %v72_v31, %v73_v32  ;;  %s225_s23 = sld [smem:[#allocation2 + $0x181]]  ;;  %s226_s24 = sld [smem:[#allocation2 + $0x185]] }
  0x20   :  { %v82_v35 = vstv %s347_s12  ;;  %v83_v38 = vstv %s349_s13  ;;  %v79_v50 = vsel %vm343_vm0, %v77_v33, %v78_v34  ;;  %s421_s1 = sld [smem:[#allocation2 + $0x202]]  ;;  %s423_s25 = sld [smem:[#allocation2 + $0x206]] }
  0x21   :  { %v87_v39 = vstv %s355_s14  ;;  %v88_v40 = vstv %s357_s15  ;;  %v84_v51 = vsel %vm343_vm0, %v82_v35, %v83_v38  ;;  %s425_s26 = sld [smem:[#allocation2 + $0x182]]  ;;  %s427_s27 = sld [smem:[#allocation2 + $0x186]] }
  0x22   :  { %v89_v52 = vsel %vm343_vm0, %v87_v39, %v88_v40  ;;  %s429_s28 = sld [smem:[#allocation2 + $0x203]]  ;;  %s431_s29 = sld [smem:[#allocation2 + $0x207]]  ;;  %v112_v61 = vstv %s409_s16  ;;  %v113_v62 = vstv %s411_s17 }
  0x23   :  { %s433_s30 = sld [smem:[#allocation2 + $0x183]]  ;;  %s435_s4 = sld [smem:[#allocation2 + $0x187]]  ;;  %v117_v1 = vstv %s413_s18  ;;  %v118_v2 = vstv %s415_s20  ;;  %v114_v6 = vsel %vm343_vm0, %v112_v61, %v113_v62 }
  0x24   :  { %v92_v63 = vstv %s417_s21  ;;  %v119_v12 = vsel %vm343_vm0, %v117_v1, %v118_v2  ;;  %s241_s5 = sld [smem:[#allocation2 + $0x282]]  ;;  %s242_s6 = sld [smem:[#allocation2 + $0x283]] }
  0x25   :  { %v97_v3 = vstv %s225_s23  ;;  %v98_v5 = vstv %s226_s24  ;;  %s239_s7 = sld [smem:[#allocation2 + $0x280]]  ;;  %s240_s8 = sld [smem:[#allocation2 + $0x281]] }
  0x26   :  { %v122_v7 = vstv %s421_s1  ;;  %v123_v8 = vstv %s423_s25  ;;  %v99_v13 = vsel %vm343_vm0, %v97_v3, %v98_v5 }
  0x27   :  { %v102_v10 = vstv %s425_s26  ;;  %v103_v11 = vstv %s427_s27  ;;  %v124_v20 = vsel %vm343_vm0, %v122_v7, %v123_v8 }
  0x28   :  { %v127_v15 = vstv %s429_s28  ;;  %v128_v16 = vstv %s431_s29 }
  0x29   :  { %v107_v17 = vstv %s433_s30  ;;  %v108_v18 = vstv %s435_s4 }
  0x2a   :  { %v137_v40 = vstv %s241_s5 }
  0x82   :  { %v142_v21 = vpop.permute.xlu0 %141 }
  0x83   :  { %v145_v26 = vsel %vm343_vm0, %v297_v0, %v142_v21 }
  0x84   :  { %v147_v36 = vmul.f32 %v145_v26, %v34_v22  ;;  %v154_v41 = vmul.f32 %v145_v26, %v39_v23  ;;  %v163_v42 = vmul.f32 %v145_v26, %v44_v24  ;;  %v172_v43 = vmul.f32 %v145_v26, %v49_v25 }
  0x85   :  { %v104_v22 = vsel %vm343_vm0, %v102_v10, %v103_v11 }
  0x86   :  { %v144_v37 = vpop.permute.xlu0 %143 }
  0x87   :  { %v146_v44 = vsel %vm343_vm0, %v144_v37, %v297_v0  ;;  %v93_v0 = vstv %s419_s22 }
  0x88   :  { %v148_v45 = vmul.f32 %v146_v44, %v54_v27  ;;  %v155_v46 = vmul.f32 %v146_v44, %v59_v28  ;;  %v164_v47 = vmul.f32 %v146_v44, %v64_v29  ;;  %v173_v48 = vmul.f32 %v146_v44, %v69_v30 }
  0x89   :  { %v94_v9 = vsel %vm343_vm0, %v92_v63, %v93_v0  ;;  %v129_v28 = vsel %vm343_vm0, %v127_v15, %v128_v16  ;;  %v109_v29 = vsel %vm343_vm0, %v107_v17, %v108_v18  ;;  %v132_v44 = vstv %s239_s7 }
  0x8a   :  { %v149_v53 = vadd.f32 %v148_v45, %v147_v36  ;;  %v156_v54 = vadd.f32 %v155_v46, %v154_v41  ;;  %v165_v55 = vadd.f32 %v164_v47, %v163_v42  ;;  %v174_v56 = vadd.f32 %v173_v48, %v172_v43 }
  0x8b   :  { %v138_v41 = vstv %s242_s6  ;;  %v133_v45 = vstv %s240_s8 }
  0x8c   :  { %v150_v57 = vadd.f32 %v149_v53, %v74_v49  ;;  %v157_v58 = vadd.f32 %v156_v54, %v79_v50  ;;  %v166_v59 = vadd.f32 %v165_v55, %v84_v51  ;;  %v175_v60 = vadd.f32 %v174_v56, %v89_v52 }
  0x8d   :  { %v139_v42 = vsel %vm343_vm0, %v137_v40, %v138_v41  ;;  %v134_v48 = vsel %vm343_vm0, %v132_v44, %v133_v45 }
  0x8e   :  { %246 = vtanh.f32 %v150_v57 }
  0x8f   :  { %248 = vtanh.f32 %v157_v58 }
  0x90   :  { %250 = vtanh.f32 %v166_v59 }
  0x91   :  { %252 = vtanh.f32 %v175_v60 }
  0x98   :  { %v247_v14 = vpop.eup %246 }
  0x99   :  { %v249_v19 = vpop.eup %248  ;;  %v153_v21 = vmul.f32 %v247_v14, %v114_v6  ;;  %v152_v23 = vmul.f32 %v247_v14, %v94_v9 }
  0x9a   :  { %v251_v24 = vpop.eup %250  ;;  %v161_v25 = vmul.f32 %v249_v19, %v119_v12  ;;  %v159_v26 = vmul.f32 %v249_v19, %v99_v13 }
  0x9b   :  { %v253_v27 = vpop.eup %252  ;;  %v170_v31 = vmul.f32 %v251_v24, %v124_v20  ;;  %v168_v32 = vmul.f32 %v251_v24, %v104_v22 }
  0x9c   :  { %v162_v30 = vadd.f32 %v161_v25, %v153_v21  ;;  %v160_v33 = vadd.f32 %v159_v26, %v152_v23  ;;  %v179_v35 = vmul.f32 %v253_v27, %v129_v28  ;;  %v177_v36 = vmul.f32 %v253_v27, %v109_v29 }
  0x9e   :  { %v171_v34 = vadd.f32 %v170_v31, %v162_v30  ;;  %v169_v37 = vadd.f32 %v168_v32, %v160_v33 }
  0xa0   :  { %v180_v38 = vadd.f32 %v179_v35, %v171_v34  ;;  %v178_v39 = vadd.f32 %v177_v36, %v169_v37 }
  0xa2   :  { %181 = vrot.lane.b32.xlu1 %v180_v38, %s270_s0 }
  0xa6   :  { %183 = vrot.lane.b32.xlu1 %v180_v38, %s269_s19 }
 0x114   :  { %v182_v43 = vpop.permute.xlu1 %181 }
 0x115   :  { %v188_v46 = vsel %vm343_vm0, %v182_v43, %v178_v39 }
 0x116   :  { %v189_v47 = vadd.f32 %v188_v46, %v139_v42 }
 0x118   :  { %190 = vst [vmem:[%s486_s3] sm:$0xff] %v189_v47  ;;  %v184_v49 = vpop.permute.xlu1 %183 }
 0x119   :  { %v185_v50 = vsel %vm343_vm0, %v178_v39, %v184_v49 }
 0x11a   :  { %v186_v51 = vadd.f32 %v185_v50, %v134_v48 }
 0x11c   :  { %187 = vst [vmem:[%s485_s2] sm:$0xff] %v186_v51 }
 0x11d   :  { %199 = vsyncpa [#allocation3], 1 }

</bundles_post_ra>
